<compile_context>
chip_gen: v6e
topology: v6e:2x2x1
jax: 0.10.0
libtpu: 0.0.40
codegen_flags: <defaults>
</compile_context>

<pallas_src>
import jax
import jax.numpy as jnp
from jax.experimental import pallas as pl
from jax.experimental.pallas import tpu as pltpu


def _micro_ap_tile_kernel(pred_col_ref, pred_row_ref, w_ref, acc_ref):
    # acc_ref is the resident (TI, 128) f32 accumulator for this i block
    # (same output block index for every j) — zero it at the start of the sweep.
    @pl.when(pl.program_id(1) == 0)
    def _():
        acc_ref[...] = jnp.zeros_like(acc_ref)

    # mask[i, j] = 1 iff score_j >= score_i               (TI, TJ), VPU
    mask = (pred_row_ref[...] >= pred_col_ref[...]).astype(jnp.bfloat16)

    # MXU reduction: w[:, 0] = valid_j, w[:, 1] = target_j (rest zero), so
    #   acc[:, 0] += #valid j with s_j >= s_i
    #   acc[:, 1] += #positive j with s_j >= s_i
    # 0/1 values are exact in bf16; accumulation stays in f32.
    acc_ref[...] += jnp.dot(mask, w_ref[...], preferred_element_type=jnp.float32)


def multi_label_accuracy(pred, target, *, ti=256, tj=1024):
    """Micro average precision * 100 as a float32 scalar.

    ti/tj are the pairwise tile sizes (defaults fit comfortably inside the
    default scoped VMEM on v5e/v6e/v7x: the (ti, tj) bf16 mask is 512 KiB).
    """
    assert max(ti, tj) % min(ti, tj) == 0, "ti and tj must divide each other"
    pred = jnp.asarray(pred, jnp.float32)
    target = jnp.asarray(target, jnp.float32)

    m = pred.size
    blk = max(ti, tj)
    m_pad = ((m + blk - 1) // blk) * blk

    flat_pred = jnp.zeros((m_pad,), jnp.float32).at[:m].set(pred.reshape(-1))
    flat_tgt = jnp.zeros((m_pad,), jnp.float32).at[:m].set(target.reshape(-1))
    valid = jnp.zeros((m_pad,), jnp.float32).at[:m].set(1.0)

    pred_row = flat_pred.reshape(1, m_pad)   # j index (lane axis)
    pred_col = flat_pred.reshape(m_pad, 1)   # i index (sublane axis)

    # MXU weight: column 0 = validity mask, column 1 = targets, rest zero.
    w = jnp.zeros((m_pad, 128), jnp.bfloat16)
    w = w.at[:, 0].set(valid.astype(jnp.bfloat16))
    w = w.at[:, 1].set(flat_tgt.astype(jnp.bfloat16))

    grid = (m_pad // ti, m_pad // tj)

    acc = pl.pallas_call(
        _micro_ap_tile_kernel,
        out_shape=jax.ShapeDtypeStruct((m_pad, 128), jnp.float32),
        grid_spec=pltpu.PrefetchScalarGridSpec(
            num_scalar_prefetch=0,
            grid=grid,
            in_specs=[
                pl.BlockSpec((ti, 1), lambda i, j: (i, 0)),     # scores, i (column)
                pl.BlockSpec((1, tj), lambda i, j: (0, j)),     # scores, j (row)
                pl.BlockSpec((tj, 128), lambda i, j: (j, 0)),   # MXU weight
            ],
            out_specs=pl.BlockSpec((ti, 128), lambda i, j: (i, 0)),
        ),
        compiler_params=pltpu.CompilerParams(
            dimension_semantics=("parallel", "arbitrary")),
    )(pred_col, pred_row, w)

    # Tiny O(M) epilogue in plain JAX: precision at each positive, average.
    ge_count = acc[:m, 0]                       # #valid with score >= s_i
    pos_ge = acc[:m, 1]                         # #positives with score >= s_i
    t = flat_tgt[:m]
    prec = pos_ge / jnp.maximum(ge_count, 1.0)  # ge_count >= 1 for valid rows
    total_pos = jnp.sum(t)
    ap = jnp.where(
        total_pos > 0.5,
        jnp.sum(t * prec) / jnp.maximum(total_pos, 1.0) * 100.0,
        jnp.float32(0.0),                       # no positive labels -> 0 (sklearn warns/NaNs)
    )
    return ap


def _micro_ap_reference(pred, target):
    """Pure-JAX reference using the same pairwise '>=' threshold definition."""
    s = pred.reshape(-1).astype(jnp.float32)
    t = target.reshape(-1).astype(jnp.float32)
    ge = (s[None, :] >= s[:, None]).astype(jnp.float32)
    ge_count = ge.sum(axis=1)
    pos_ge = (ge * t[None, :]).sum(axis=1)
    prec = pos_ge / ge_count
    return (t * prec).sum() / t.sum() * 100.0


if __name__ == "__main__":
    key = jax.random.PRNGKey(0)
    k_pred, k_tgt = jax.random.split(key)

    batch, num_labels = 16, 32              # flattened M = 512
    pred = jax.random.normal(k_pred, (batch, num_labels), dtype=jnp.float32)
    target = (jax.random.uniform(k_tgt, (batch, num_labels)) < 0.3).astype(jnp.float32)
    # guarantee at least one positive so AP is well defined
    target = target.at[0, 0].set(1.0)

    # Small tiles so the demo exercises the multi-block (i, j) accumulation path.
    ap = multi_label_accuracy(pred, target, ti=128, tj=256)
    jax.block_until_ready(ap)

    ref = _micro_ap_reference(pred, target)
    assert jnp.allclose(ap, ref, rtol=1e-5, atol=1e-4), (ap, ref)

    print("KERNEL_OK")
</pallas_src>

<mosaic_0001>
module attributes {stable_mosaic.version = 11 : i64} {
  func.func @_micro_ap_tile_kernel(%arg0: i32, %arg1: i32, %arg2: memref<128x1xf32, #tpu.memory_space<vmem>>, %arg3: memref<1x256xf32, #tpu.memory_space<vmem>>, %arg4: memref<256x128xbf16, #tpu.memory_space<vmem>>, %arg5: memref<128x128xf32, #tpu.memory_space<vmem>>) attributes {dimension_semantics = [#tpu.dimension_semantics<parallel>, #tpu.dimension_semantics<arbitrary>], iteration_bounds = array<i64: 4, 2>, scalar_prefetch = 0 : i64, scratch_operands = 0 : i64, tpu.core_type = #tpu.core_type<tc>, window_params = [{transform_indices = @transform_0, window_bounds = array<i64: 128, 1>}, {transform_indices = @transform_1, window_bounds = array<i64: 1, 256>}, {transform_indices = @transform_2, window_bounds = array<i64: 256, 128>}, {transform_indices = @transform_3, window_bounds = array<i64: 128, 128>}]} {
    %c0_i32 = arith.constant 0 : i32
    %0 = arith.cmpi eq, %arg1, %c0_i32 : i32
    %1 = arith.extui %0 : i1 to i32
    %c0_i32_0 = arith.constant 0 : i32
    %2 = arith.cmpi ne, %1, %c0_i32_0 : i32
    scf.if %2 {
      %cst_10 = arith.constant 0.000000e+00 : f32
      %16 = vector.broadcast %cst_10 : f32 to vector<128x128xf32>
      %c0_11 = arith.constant 0 : index
      %c0_12 = arith.constant 0 : index
      %17 = vector.load %arg5[%c0_11, %c0_12] : memref<128x128xf32, #tpu.memory_space<vmem>>, vector<128x128xf32>
      tpu.vector_store %arg5[%c0_11, %c0_12], %16 {strides = array<i32>} : memref<128x128xf32, #tpu.memory_space<vmem>>, vector<128x128xf32>,
    } else {
    }
    %c0 = arith.constant 0 : index
    %c0_1 = arith.constant 0 : index
    %3 = vector.load %arg3[%c0, %c0_1] : memref<1x256xf32, #tpu.memory_space<vmem>>, vector<1x256xf32>
    %c0_2 = arith.constant 0 : index
    %c0_3 = arith.constant 0 : index
    %4 = vector.load %arg2[%c0_2, %c0_3] : memref<128x1xf32, #tpu.memory_space<vmem>>, vector<128x1xf32>
    %5 = vector.broadcast %3 : vector<1x256xf32> to vector<128x256xf32>
    %6 = vector.broadcast %4 : vector<128x1xf32> to vector<128x256xf32>
    %7 = arith.cmpf oge, %5, %6 : vector<128x256xf32>
    %8 = arith.extui %7 : vector<128x256xi1> to vector<128x256xi32>
    %9 = arith.sitofp %8 : vector<128x256xi32> to vector<128x256xf32>
    %10 = arith.truncf %9 : vector<128x256xf32> to vector<128x256xbf16>
    %c0_4 = arith.constant 0 : index
    %c0_5 = arith.constant 0 : index
    %11 = vector.load %arg5[%c0_4, %c0_5] : memref<128x128xf32, #tpu.memory_space<vmem>>, vector<128x128xf32>
    %c0_6 = arith.constant 0 : index
    %c0_7 = arith.constant 0 : index
    %12 = vector.load %arg4[%c0_6, %c0_7] : memref<256x128xbf16, #tpu.memory_space<vmem>>, vector<256x128xbf16>
    %cst = arith.constant dense<0.000000e+00> : vector<128x128xf32>
    %13 = tpu.matmul %10, %12, %cst {dimension_numbers = #tpu.dot_dimension_numbers<[1], [0], [0], [1], [0, 0, 1, 1], [], []>} : vector<128x256xbf16>, vector<256x128xbf16>, vector<128x128xf32> -> vector<128x128xf32>
    %14 = arith.addf %11, %13 : vector<128x128xf32>
    %c0_8 = arith.constant 0 : index
    %c0_9 = arith.constant 0 : index
    %15 = vector.load %arg5[%c0_8, %c0_9] : memref<128x128xf32, #tpu.memory_space<vmem>>, vector<128x128xf32>
    tpu.vector_store %arg5[%c0_8, %c0_9], %14 {strides = array<i32>} : memref<128x128xf32, #tpu.memory_space<vmem>>, vector<128x128xf32>,
    return
  }
  func.func @transform_0(%arg0: i32, %arg1: i32) -> (i32, i32) {
    %c0_i32 = arith.constant 0 : i32
    %c0_i32_0 = arith.constant 0 : i32
    return %arg0, %c0_i32 : i32, i32
  }
  func.func @transform_1(%arg0: i32, %arg1: i32) -> (i32, i32) {
    %c0_i32 = arith.constant 0 : i32
    %c0_i32_0 = arith.constant 0 : i32
    return %c0_i32, %arg1 : i32, i32
  }
  func.func @transform_2(%arg0: i32, %arg1: i32) -> (i32, i32) {
    %c0_i32 = arith.constant 0 : i32
    %c0_i32_0 = arith.constant 0 : i32
    return %arg1, %c0_i32 : i32, i32
  }
  func.func @transform_3(%arg0: i32, %arg1: i32) -> (i32, i32) {
    %c0_i32 = arith.constant 0 : i32
    %c0_i32_0 = arith.constant 0 : i32
    return %arg0, %c0_i32 : i32, i32
  }
}

</mosaic_0001>

<bundles_post_ra>
// kernel: tpu_custom_call.1
= control target key start
LH: loop header
LB: loop body
LE: loop exit
PB: predicated region body
PF: predicated region fallthrough
CT: control target
= control target key end

     0   :  { %8 = vsyncpa [#allocation3], 0  ;;  %s1538_s0 = inlined_call_operand.vmem [shape: f32[512,1], index: 0, kind: input, shape index: {}]   ;;  %s1539_s1 = inlined_call_operand.vmem [shape: f32[1,512], index: 1, kind: input, shape index: {}]   ;;  %s1540_s2 = inlined_call_operand.vmem [shape: bf16[512,128], index: 2, kind: input, shape index: {}]   ;;  %s1541_s3 = inlined_call_operand.hbm [shape: f32[512,128], index: 3, kind: output, shape index: {}]  }
   0x1   :  { %10 = vsyncpa [#allocation3 + $0x1], 0  ;;  %s1239_s12 = smov 0   ;;  %s1241_s13 = smov 0  }
   0x2   :  { %s1243_s14 = smov 0   ;;  %s1245_s15 = smov 0  }
   0x3   :  { %s1247_s16 = smov 0   ;;  %s1249_s17 = smov 0  }
   0x4   :  { %s1251_s18 = smov 0   ;;  %s1253_s19 = smov 0  }
   0x5 LB: > { %s847_s20 = sadd.s32 4294967295, %s1211_s19   ;;  %s848_s21 = sadd.s32 4294967294, %s1211_s19   ;;  %s1211_s19 = sphi %s1253_s19, %s16_s19   ;;  %s1207_s18 = sphi %s1251_s18, %s1557_s18   ;;  %s1203_s17 = sphi %s1249_s17, %s1556_s17   ;;  %s1199_s16 = sphi %s1247_s16, %s1555_s16   ;;  %s1195_s15 = sphi %s1245_s15, %s1554_s15   ;;  %s1191_s14 = sphi %s1243_s14, %s1553_s14   ;;  %s1187_s13 = sphi %s1241_s13, %s1552_s13   ;;  %s1183_s12 = sphi %s1239_s12, %s1551_s12  }
   0x6   : > { %s25_s22 = sadd.s32 1, %s1203_s17  ;;  %s28_s23 = sadd.s32 1, %s1207_s18 }
   0x7   : > { %p26_p0 = scmp.ge.s32.totalorder %s25_s22, 2  ;;  %p123_p1 = scmp.ne.s32.totalorder %s1191_s14, %s1187_s13 }
   0x8   : > { %p124_p2 = scmp.eq.s32.totalorder %s847_s20, 7  ;;  %p129_p4 = scmp.ne.s32.totalorder %s1187_s13, %s1183_s12 }
   0x9   : > { %s1559_s22 = smov (%p26_p0, %s25_s22), 0  ;;  %s1561_s23 = smov (!%p26_p0, %s28_s23), %s1207_s18 }
   0xa   : > { %p1288_p3 = por %p124_p2, %p123_p1  ;;  %p30_p5 = scmp.ge.s32.totalorder %s1561_s23, 4 }
   0xb   : > { %p130_p6 = scmp.eq.s32.totalorder %s848_s21, 7  ;;  %p851_p7 = scmp.ge.s32.totalorder %s1211_s19, 1 }
   0xc   : > { %p174_p8 = scmp.lt.s32.totalorder %s1211_s19, 9  ;;  %s1563_s23 = smov (%p30_p5, %s1561_s23), 0 }
   0xd   : > { %1545 = sst [smem:[#allocation5_spill]] %s1563_s23  ;;  %p1298_p9 = por %p130_p6, %p129_p4 }
   0xe   : > { %p175_p10 = pnand %p851_p7, %p174_p8  ;;  %s110_s26 = ssub.s32 %s1207_s18, %s1563_s23 }
   0xf   : > { %s113_s27 = sadd.s32 1, %s1191_s14  ;;  %p111_p11 = scmp.eq.s32.totalorder %s110_s26, 0 }
  0x10   : > { %178 = sbr.rel (%p175_p10) target bundleno = 419 (0x1a3), region = 32  ;;  %s1542_s29 = sand.u32 (!%p175_p10), 1, %s1187_s13  }
  0x11   : > { %s1306_s28 = scalar_select %p111_p11, %s1191_s14, %s113_s27  }
  0x12   : > { %s853_s30 = sshll.u32 (!%p175_p10), %s1199_s16, 4  ;;  %s852_s4 = sshll.u32 (!%p175_p10), %s1542_s29, 7 }
  0x13   : > { %p208_p12 = scmp.lt.s32.totalorder (!%p175_p10), %s853_s30, 63  ;;  %s855_s5 = sshll.u32 (!%p175_p10), %s1195_s15, 1 }
  0x14   : > { %p214_p13 = scmp.lt.s32.totalorder (!%p175_p10), %s855_s5, 3  ;;  %s856_s6 = sshll.u32 (!%p175_p10), %s1195_s15, 5 }
  0x15   : > { %s1565_s30 = smov (!%p208_p12, %s853_s30), 63  ;;  %p219_p0 = scmp.lt.s32.totalorder %s856_s6, 63 }
  0x16   : > { %s854_s7 = sshll.u32 %s1565_s30, 3  ;;  %s1567_s5 = smov (!%p214_p13, %s855_s5), 3 }
  0x17   : > { %s1317_s10 = scalar_lea.vmem %s1538_s0, %s854_s7  ;;  %s1569_s6 = smov (!%p219_p0, %s856_s6), 63 }
  0x18   : > { %s216_s21 = scalar_lea.vmem %s1539_s1, %s1567_s5  ;;  %s857_s26 = sshll.u32 %s1569_s6, 2 }
  0x19   : > { %s1328_s23 = scalar_lea.vmem %s1540_s2, %s857_s26  ;;  %s1330_s30 = scalar_lea.vmem [#allocation2], %s852_s4 }
  0x1a   : > { %p858_p1 = scmp.ne.s32.totalorder %s1195_s15, 0 }
  0x1c   : > { %229 = sbr.rel (%p858_p1) target bundleno = 42 (0x2a), region = 36 }
  0x21   : > { %v1213_v0 = vmov 0.0  }
  0x22   : > { %230 = vst [vmem:[%s1330_s30] sm:$0xff] %v1213_v0  ;;  %231 = vst [vmem:[%s1330_s30 + $0x8] sm:$0xff] %v1213_v0 }
  0x23   : > { %232 = vst [vmem:[%s1330_s30 + $0x10] sm:$0xff] %v1213_v0  ;;  %233 = vst [vmem:[%s1330_s30 + $0x18] sm:$0xff] %v1213_v0 }
  0x24   : > { %234 = vst [vmem:[%s1330_s30 + $0x20] sm:$0xff] %v1213_v0  ;;  %235 = vst [vmem:[%s1330_s30 + $0x28] sm:$0xff] %v1213_v0 }
  0x25   : > { %236 = vst [vmem:[%s1330_s30 + $0x30] sm:$0xff] %v1213_v0  ;;  %237 = vst [vmem:[%s1330_s30 + $0x38] sm:$0xff] %v1213_v0 }
  0x26   : > { %238 = vst [vmem:[%s1330_s30 + $0x40] sm:$0xff] %v1213_v0  ;;  %239 = vst [vmem:[%s1330_s30 + $0x48] sm:$0xff] %v1213_v0 }
  0x27   : > { %240 = vst [vmem:[%s1330_s30 + $0x50] sm:$0xff] %v1213_v0  ;;  %241 = vst [vmem:[%s1330_s30 + $0x58] sm:$0xff] %v1213_v0 }
  0x28   : > { %242 = vst [vmem:[%s1330_s30 + $0x60] sm:$0xff] %v1213_v0  ;;  %243 = vst [vmem:[%s1330_s30 + $0x68] sm:$0xff] %v1213_v0 }
  0x29   : > { %244 = vst [vmem:[%s1330_s30 + $0x70] sm:$0xff] %v1213_v0  ;;  %245 = vst [vmem:[%s1330_s30 + $0x78] sm:$0xff] %v1213_v0 }
  0x2a PF: > { %v255_v1 = vld [vmem:[%s1317_s10 + $0x40] sm:$0xff]  ;;  %v1214_v3 = vmov 0   ;;  %v256_v4 = vld [vmem:[%s1317_s10 + $0x48] sm:$0xff]  ;;  %v250_v6 = vld [vmem:[%s1317_s10 + $0x18] sm:$0xff]  ;;  %v264_v34 = vlaneseq  ;;  %v1215_v48 = vmov 1.0|1.0  }
  0x2b   : > { %v247_v2 = vld [vmem:[%s1317_s10] sm:$0xff]  ;;  %1102 = vset.pattern.permute.xlu1 %v1214_v3  ;;  %1101 = vset.pattern.permute.xlu0 %v1214_v3  ;;  %v248_v5 = vld [vmem:[%s1317_s10 + $0x8] sm:$0xff]  ;;  %v249_v7 = vld [vmem:[%s1317_s10 + $0x10] sm:$0xff]  ;;  %s753_s4 = sshll.u32 %s1330_s30, 4  ;;  %s1481_s4 = int_to_ptr.vmem [resolvable:$true] %s753_s4 }
  0x2c   : > { %316 = vperm.xlu1 %1102, %v255_v1   ;;  %276 = vperm.xlu0 %1101, %v247_v2   ;;  %v1103_v8 = vld [vmem:[%s1328_s23 + $0x78] sm:$0xff]   ;;  %v1105_v10 = vld [vmem:[%s1328_s23 + $0x70] sm:$0xff]   ;;  %v1107_v14 = vld [vmem:[%s1328_s23 + $0x68] sm:$0xff]   ;;  %v265_v35 = vshrl.u32 %v264_v34, 7  ;;  %s1119_s9 = scalar_lea.vmem %s1481_s4, 2048 }
  0x2d   : > { %v1104_v9 = vld [vmem:[%s1328_s23 + $0x38] sm:$0xff]   ;;  %945 = vmatprep.subr.bf16.mxu0 %v1103_v8  ;;  %1009 = vmatprep.subr.bf16.mxu1 %v1103_v8  ;;  %v1106_v12 = vld [vmem:[%s1328_s23 + $0x30] sm:$0xff]   ;;  %v252_v15 = vld [vmem:[%s1317_s10 + $0x28] sm:$0xff]  ;;  %p1120_p2 = scmp.ne.s32.totalorder %s1481_s4, %s1119_s9 }
  0x2e   : > { %v258_v11 = vld [vmem:[%s1317_s10 + $0x58] sm:$0xff]  ;;  %946 = vmatpush3.bf16.msra.mxu0 %v1104_v9  ;;  %1017 = vmatpush3.bf16.msra.mxu1 %v1104_v9  ;;  %v257_v13 = vld [vmem:[%s1317_s10 + $0x50] sm:$0xff]  ;;  %v1108_v16 = vld [vmem:[%s1328_s23 + $0x28] sm:$0xff]   ;;  %v266_v36 = vsub.s32 0, %v265_v35  ;;  %v270_v38 = vsub.s32 1, %v265_v35 }
  0x2f   : > { %947 = vmatprep.subr.bf16.mxu0 %v1105_v10  ;;  %1010 = vmatprep.subr.bf16.mxu1 %v1105_v10  ;;  %v251_v17 = vld [vmem:[%s1317_s10 + $0x20] sm:$0xff]  ;;  %v260_v20 = vld [vmem:[%s1317_s10 + $0x68] sm:$0xff]  ;;  %v1111_v22 = vld [vmem:[%s1328_s23 + $0x58] sm:$0xff]   ;;  %p1121_p4 = pnand %p1120_p2, %p1288_p3 }
  0x30   : > { %321 = vperm.xlu1 %1102, %v256_v4   ;;  %281 = vperm.xlu0 %1101, %v248_v5   ;;  %v1109_v18 = vld [vmem:[%s1328_s23 + $0x60] sm:$0xff]   ;;  %v1112_v23 = vld [vmem:[%s1328_s23 + $0x18] sm:$0xff]   ;;  %v253_v25 = vld [vmem:[%s1317_s10 + $0x30] sm:$0xff] }
  0x31   : > { %v1110_v19 = vld [vmem:[%s1328_s23 + $0x20] sm:$0xff]   ;;  %v254_v24 = vld [vmem:[%s1317_s10 + $0x38] sm:$0xff]  ;;  %v1113_v26 = vld [vmem:[%s1328_s23 + $0x50] sm:$0xff]   ;;  %p1122_p5 = pneg %p1121_p4 }
  0x32   : > { %948 = vmatpush3.bf16.msra.mxu0 %v1106_v12  ;;  %1018 = vmatpush3.bf16.msra.mxu1 %v1106_v12  ;;  %v259_v21 = vld [vmem:[%s1317_s10 + $0x60] sm:$0xff]  ;;  %v1114_v27 = vld [vmem:[%s1328_s23 + $0x10] sm:$0xff]   ;;  %v262_v28 = vld [vmem:[%s1317_s10 + $0x78] sm:$0xff] }
  0x33   : > { %949 = vmatprep.subr.bf16.mxu0 %v1107_v14  ;;  %1011 = vmatprep.subr.bf16.mxu1 %v1107_v14  ;;  %v261_v29 = vld [vmem:[%s1317_s10 + $0x70] sm:$0xff]  ;;  %v1115_v30 = vld [vmem:[%s1328_s23 + $0x48] sm:$0xff]   ;;  %v1117_v32 = vld [vmem:[%s1328_s23 + $0x40] sm:$0xff]   ;;  %s1216_s10 = smov [#allocation2]  }
  0x34   : > { %291 = vperm.xlu1 %1102, %v250_v6   ;;  %286 = vperm.xlu0 %1101, %v249_v7   ;;  %v1116_v31 = vld [vmem:[%s1328_s23 + $0x8] sm:$0xff]   ;;  %v1118_v33 = vld [vmem:[%s1328_s23] sm:$0xff]   ;;  %s944_s23 = sshll.u32 %s1199_s16, 11  ;;  %s1549_s16 = sand.u32 1, %s1187_s13  }
  0x35   : > { %v246_v37 = vld [vmem:[%s216_s21] sm:$0x3]  ;;  %v467_v7 = vld [vmem:[%s1330_s30 + $0x8] sm:$0xff]  ;;  %s1479_s7 = scalar_lea.hbm %s1541_s3, %s944_s23  ;;  %s1487_s8 = scalar_lea.sflag [#allocation3], %s1549_s16 }
  0x36   : > { %950 = vmatpush3.bf16.msra.mxu0 %v1108_v16  ;;  %1019 = vmatpush3.bf16.msra.mxu1 %v1108_v16  ;;  %v1386_v41 = vrot.slane %v246_v37, %v266_v36  ;;  %v1388_v42 = vrot.slane %v246_v37, %v270_v38  ;;  %v466_v61 = vld [vmem:[%s1330_s30] sm:$0xff]  ;;  %v475_v10 = vld [vmem:[%s1330_s30 + $0x48] sm:$0xff]  ;;  %s1123_s11 = sshll.u32 %s1216_s10, 4  ;;  %s1124_s11 = int_to_ptr.vmem [resolvable:$false] %s1123_s11 }
  0x37   : > { %951 = vmatprep.subr.bf16.mxu0 %v1109_v18  ;;  %1012 = vmatprep.subr.bf16.mxu1 %v1109_v18  ;;  %v474_v0 = vld [vmem:[%s1330_s30 + $0x40] sm:$0xff]  ;;  %s1125_s20 = scalar_lea.vmem %s1124_s11, 4096  ;;  %p1126_p6 = scmp.lt.s32.totalorder %s1481_s4, %s1124_s11 }
  0x38   : > { %331 = vperm.xlu1 %1102, %v258_v11   ;;  %326 = vperm.xlu0 %1101, %v257_v13   ;;  %v470_v37 = vld [vmem:[%s1330_s30 + $0x20] sm:$0xff]  ;;  %p1127_p7 = scmp.lt.s32.totalorder %s1125_s20, %s1119_s9 }
  0x3a   : > { %952 = vmatpush3.bf16.msra.mxu0 %v1110_v19  ;;  %1020 = vmatpush3.bf16.msra.mxu1 %v1110_v19  ;;  %p1128_p8 = por %p1127_p7, %p1126_p6 }
  0x3b   : > { %953 = vmatprep.subr.bf16.mxu0 %v1111_v22  ;;  %1013 = vmatprep.subr.bf16.mxu1 %v1111_v22 }
  0x3c   : > { %301 = vperm.xlu1 %1102, %v252_v15   ;;  %296 = vperm.xlu0 %1101, %v251_v17   ;;  %v468_v17 = vld [vmem:[%s1330_s30 + $0x10] sm:$0xff]  ;;  %p1129_p10 = pnand %p1128_p8, %p1122_p5 }
  0x3e   : > { %954 = vmatpush3.bf16.msra.mxu0 %v1112_v23  ;;  %1021 = vmatpush3.bf16.msra.mxu1 %v1112_v23 }
  0x3f   : > { %955 = vmatprep.subr.bf16.mxu0 %v1113_v26  ;;  %1014 = vmatprep.subr.bf16.mxu1 %v1113_v26 }
  0x40   : > { %341 = vperm.xlu1 %1102, %v260_v20   ;;  %336 = vperm.xlu0 %1101, %v259_v21   ;;  %v476_v20 = vld [vmem:[%s1330_s30 + $0x50] sm:$0xff] }
  0x42   : > { %956 = vmatpush3.bf16.msra.mxu0 %v1114_v27  ;;  %1022 = vmatpush3.bf16.msra.mxu1 %v1114_v27  ;;  %v469_v27 = vld [vmem:[%s1330_s30 + $0x18] sm:$0xff] }
  0x43   : > { %957 = vmatprep.subr.bf16.mxu0 %v1115_v30  ;;  %1015 = vmatprep.subr.bf16.mxu1 %v1115_v30  ;;  %v477_v30 = vld [vmem:[%s1330_s30 + $0x58] sm:$0xff] }
  0x44   : > { %311 = vperm.xlu1 %1102, %v254_v24   ;;  %306 = vperm.xlu0 %1101, %v253_v25  }
  0x46   : > { %958 = vmatpush3.bf16.msra.mxu0 %v1116_v31  ;;  %1023 = vmatpush3.bf16.msra.mxu1 %v1116_v31 }
  0x47   : > { %959 = vmatprep.subr.bf16.mxu0 %v1117_v32  ;;  %1016 = vmatprep.subr.bf16.mxu1 %v1117_v32 }
  0x48   : > { %351 = vperm.xlu1 %1102, %v262_v28   ;;  %346 = vperm.xlu0 %1101, %v261_v29  }
  0x4a   : > { %960 = vmatpush3.bf16.msra.mxu0 %v1118_v33  ;;  %1024 = vmatpush3.bf16.msra.mxu1 %v1118_v33 }
  0xa7   : > { %v317_v39 = vpop.permute.xlu1 %316  ;;  %v277_v40 = vpop.permute.xlu0 %276 }
  0xa8   : > { %vm370_vm0 = vcmp.ge.f32.partialorder %v1386_v41, %v317_v39  ;;  %vm354_vm4 = vcmp.ge.f32.partialorder %v1386_v41, %v277_v40  ;;  %vm355_vm8 = vcmp.ge.f32.partialorder %v1388_v42, %v277_v40  ;;  %vm371_vm10 = vcmp.ge.f32.partialorder %v1388_v42, %v317_v39  ;;  %v478_v40 = vld [vmem:[%s1330_s30 + $0x60] sm:$0xff] }
  0xab   : > { %v322_v43 = vpop.permute.xlu1 %321  ;;  %v282_v44 = vpop.permute.xlu0 %281 }
  0xac   : > { %vm372_vm1 = vcmp.ge.f32.partialorder %v1386_v41, %v322_v43  ;;  %vm356_vm2 = vcmp.ge.f32.partialorder %v1386_v41, %v282_v44  ;;  %vm357_vm3 = vcmp.ge.f32.partialorder %v1388_v42, %v282_v44  ;;  %vm373_vm6 = vcmp.ge.f32.partialorder %v1388_v42, %v322_v43 }
  0xad   : > { %vm1395_vm5 = vmpackc.low %vm372_vm1, %vm370_vm0 }
  0xae   : > { %vm909_vm7 = vmpackc.low %vm356_vm2, %vm354_vm4 }
  0xaf   : > { %vm907_vm9 = vmpackc.low %vm357_vm3, %vm355_vm8  ;;  %v292_v46 = vpop.permute.xlu1 %291  ;;  %v287_v47 = vpop.permute.xlu0 %286 }
  0xb0   : > { %908 = vmatprep.mubr.msk.bf16.mxu0 %vm907_vm9, %v1215_v48  ;;  %vm923_vm11 = vmpackc.low %vm373_vm6, %vm371_vm10  ;;  %vm361_vm12 = vcmp.ge.f32.partialorder %v1388_v42, %v292_v46  ;;  %vm359_vm13 = vcmp.ge.f32.partialorder %v1388_v42, %v287_v47  ;;  %vm360_vm3 = vcmp.ge.f32.partialorder %v1386_v41, %v292_v46  ;;  %vm358_vm4 = vcmp.ge.f32.partialorder %v1386_v41, %v287_v47  ;;  %v471_v47 = vld [vmem:[%s1330_s30 + $0x28] sm:$0xff] }
  0xb1   : > { %924 = vmatprep.mubr.msk.bf16.mxu1 %vm923_vm11, %v1215_v48  ;;  %vm911_vm14 = vmpackc.low %vm361_vm12, %vm359_vm13  ;;  %910 = vmatmul.mubr.msk.bf16.vlgmr.msra.gmra.mxu0 %vm909_vm7, %v1215_v48 }
  0xb2   : > { %926 = vmatmul.mubr.msk.bf16.vlgmr.msra.gmra.mxu1 %vm1395_vm5, %v1215_v48  ;;  %912 = vmatprep.mubr.msk.bf16.mxu0 %vm911_vm14, %v1215_v48  ;;  %vm913_vm7 = vmpackc.low %vm360_vm3, %vm358_vm4 }
  0xb3   : > { %v332_v49 = vpop.permute.xlu1 %331  ;;  %v327_v50 = vpop.permute.xlu0 %326 }
  0xb4   : > { %vm376_vm15 = vcmp.ge.f32.partialorder %v1386_v41, %v332_v49  ;;  %vm377_vm0 = vcmp.ge.f32.partialorder %v1388_v42, %v332_v49  ;;  %vm374_vm1 = vcmp.ge.f32.partialorder %v1386_v41, %v327_v50  ;;  %vm375_vm2 = vcmp.ge.f32.partialorder %v1388_v42, %v327_v50  ;;  %v479_v50 = vld [vmem:[%s1330_s30 + $0x68] sm:$0xff] }
  0xb5   : > { %vm927_vm6 = vmpackc.low %vm377_vm0, %vm375_vm2 }
  0xb6   : > { %928 = vmatprep.mubr.msk.bf16.mxu1 %vm927_vm6, %v1215_v48  ;;  %vm929_vm5 = vmpackc.low %vm376_vm15, %vm374_vm1 }
  0xb7   : > { %v302_v51 = vpop.permute.xlu1 %301  ;;  %v297_v52 = vpop.permute.xlu0 %296 }
  0xb8   : > { %vm365_vm8 = vcmp.ge.f32.partialorder %v1388_v42, %v302_v51  ;;  %vm363_vm9 = vcmp.ge.f32.partialorder %v1388_v42, %v297_v52  ;;  %vm364_vm15 = vcmp.ge.f32.partialorder %v1386_v41, %v302_v51  ;;  %vm362_vm0 = vcmp.ge.f32.partialorder %v1386_v41, %v297_v52 }
  0xb9   : > { %vm915_vm10 = vmpackc.low %vm365_vm8, %vm363_vm9  ;;  %914 = vmatmul.mubr.msk.bf16.gmra.mxu0 %vm913_vm7, %v1215_v48 }
  0xba   : > { %930 = vmatmul.mubr.msk.bf16.gmra.mxu1 %vm929_vm5, %v1215_v48  ;;  %916 = vmatprep.mubr.msk.bf16.mxu0 %vm915_vm10, %v1215_v48  ;;  %vm917_vm3 = vmpackc.low %vm364_vm15, %vm362_vm0 }
  0xbb   : > { %v342_v53 = vpop.permute.xlu1 %341  ;;  %v337_v54 = vpop.permute.xlu0 %336 }
  0xbc   : > { %vm380_vm11 = vcmp.ge.f32.partialorder %v1386_v41, %v342_v53  ;;  %vm381_vm12 = vcmp.ge.f32.partialorder %v1388_v42, %v342_v53  ;;  %vm378_vm13 = vcmp.ge.f32.partialorder %v1386_v41, %v337_v54  ;;  %vm379_vm14 = vcmp.ge.f32.partialorder %v1388_v42, %v337_v54 }
  0xbd   : > { %vm931_vm1 = vmpackc.low %vm381_vm12, %vm379_vm14 }
  0xbe   : > { %932 = vmatprep.mubr.msk.bf16.mxu1 %vm931_vm1, %v1215_v48  ;;  %vm933_vm2 = vmpackc.low %vm380_vm11, %vm378_vm13 }
  0xbf   : > { %v312_v55 = vpop.permute.xlu1 %311  ;;  %v307_v56 = vpop.permute.xlu0 %306 }
  0xc0   : > { %vm369_vm4 = vcmp.ge.f32.partialorder %v1388_v42, %v312_v55  ;;  %vm367_vm6 = vcmp.ge.f32.partialorder %v1388_v42, %v307_v56  ;;  %vm368_vm11 = vcmp.ge.f32.partialorder %v1386_v41, %v312_v55  ;;  %vm366_vm12 = vcmp.ge.f32.partialorder %v1386_v41, %v307_v56 }
  0xc1   : > { %vm919_vm5 = vmpackc.low %vm369_vm4, %vm367_vm6  ;;  %918 = vmatmul.mubr.msk.bf16.gmra.mxu0 %vm917_vm3, %v1215_v48 }
  0xc2   : > { %934 = vmatmul.mubr.msk.bf16.gmra.mxu1 %vm933_vm2, %v1215_v48  ;;  %920 = vmatprep.mubr.msk.bf16.mxu0 %vm919_vm5, %v1215_v48  ;;  %vm921_vm15 = vmpackc.low %vm368_vm11, %vm366_vm12 }
  0xc3   : > { %v352_v57 = vpop.permute.xlu1 %351  ;;  %v347_v58 = vpop.permute.xlu0 %346 }
  0xc4   : > { %vm384_vm7 = vcmp.ge.f32.partialorder %v1386_v41, %v352_v57  ;;  %vm385_vm8 = vcmp.ge.f32.partialorder %v1388_v42, %v352_v57  ;;  %vm382_vm9 = vcmp.ge.f32.partialorder %v1386_v41, %v347_v58  ;;  %vm383_vm10 = vcmp.ge.f32.partialorder %v1388_v42, %v347_v58  ;;  %v472_v57 = vld [vmem:[%s1330_s30 + $0x30] sm:$0xff] }
  0xc5   : > { %vm935_vm13 = vmpackc.low %vm385_vm8, %vm383_vm10 }
  0xc6   : > { %936 = vmatprep.mubr.msk.bf16.mxu1 %vm935_vm13, %v1215_v48  ;;  %vm937_vm14 = vmpackc.low %vm384_vm7, %vm382_vm9 }
  0xc9   : > { %922 = vmatmul.mubr.msk.bf16.gmra.mxu0 %vm921_vm15, %v1215_v48 }
  0xca   : > { %938 = vmatmul.mubr.msk.bf16.gmra.mxu1 %vm937_vm14, %v1215_v48 }
 0x171   : > { %v961_v59 = vpop.f32.mrf.mxu0 }
 0x172   : > { %v985_v60 = vpop.f32.mrf.mxu1 }
 0x173   : > { %v962_v62 = vpop.f32.mrf.mxu0 }
 0x174   : > { %v963_v63 = vadd.f32 %v962_v62, %v961_v59  ;;  %v986_v1 = vpop.f32.mrf.mxu1 }
 0x175   : > { %v987_v2 = vadd.f32 %v986_v1, %v985_v60  ;;  %v964_v3 = vpop.f32.mrf.mxu0  ;;  %v480_v60 = vld [vmem:[%s1330_s30 + $0x70] sm:$0xff] }
 0x176   : > { %v707_v4 = vadd.f32 %v963_v63, %v466_v61  ;;  %v988_v5 = vpop.f32.mrf.mxu1 }
 0x177   : > { %v715_v6 = vadd.f32 %v987_v2, %v474_v0  ;;  %v965_v8 = vpop.f32.mrf.mxu0 }
 0x178   : > { %723 = vst [vmem:[%s1330_s30] sm:$0xff] %v707_v4  ;;  %v966_v9 = vadd.f32 %v965_v8, %v964_v3  ;;  %v989_v11 = vpop.f32.mrf.mxu1  ;;  %v473_v3 = vld [vmem:[%s1330_s30 + $0x38] sm:$0xff] }
 0x179   : > { %731 = vst [vmem:[%s1330_s30 + $0x40] sm:$0xff] %v715_v6  ;;  %v990_v12 = vadd.f32 %v989_v11, %v988_v5  ;;  %v967_v13 = vpop.f32.mrf.mxu0  ;;  %v481_v6 = vld [vmem:[%s1330_s30 + $0x78] sm:$0xff] }
 0x17a   : > { %v708_v14 = vadd.f32 %v966_v9, %v467_v7  ;;  %v991_v15 = vpop.f32.mrf.mxu1 }
 0x17b   : > { %v716_v16 = vadd.f32 %v990_v12, %v475_v10  ;;  %v968_v18 = vpop.f32.mrf.mxu0 }
 0x17c   : > { %724 = vst [vmem:[%s1330_s30 + $0x8] sm:$0xff] %v708_v14  ;;  %v969_v19 = vadd.f32 %v968_v18, %v967_v13  ;;  %v992_v21 = vpop.f32.mrf.mxu1 }
 0x17d   : > { %732 = vst [vmem:[%s1330_s30 + $0x48] sm:$0xff] %v716_v16  ;;  %v993_v22 = vadd.f32 %v992_v21, %v991_v15  ;;  %v970_v23 = vpop.f32.mrf.mxu0 }
 0x17e   : > { %v709_v24 = vadd.f32 %v969_v19, %v468_v17  ;;  %v994_v25 = vpop.f32.mrf.mxu1 }
 0x17f   : > { %v717_v26 = vadd.f32 %v993_v22, %v476_v20  ;;  %v971_v28 = vpop.f32.mrf.mxu0 }
 0x180   : > { %725 = vst [vmem:[%s1330_s30 + $0x10] sm:$0xff] %v709_v24  ;;  %v972_v29 = vadd.f32 %v971_v28, %v970_v23  ;;  %v995_v31 = vpop.f32.mrf.mxu1 }
 0x181   : > { %733 = vst [vmem:[%s1330_s30 + $0x50] sm:$0xff] %v717_v26  ;;  %v996_v32 = vadd.f32 %v995_v31, %v994_v25  ;;  %v973_v33 = vpop.f32.mrf.mxu0 }
 0x182   : > { %v710_v34 = vadd.f32 %v972_v29, %v469_v27  ;;  %v997_v35 = vpop.f32.mrf.mxu1 }
 0x183   : > { %v718_v36 = vadd.f32 %v996_v32, %v477_v30  ;;  %v974_v38 = vpop.f32.mrf.mxu0 }
 0x184   : > { %726 = vst [vmem:[%s1330_s30 + $0x18] sm:$0xff] %v710_v34  ;;  %v975_v39 = vadd.f32 %v974_v38, %v973_v33  ;;  %v998_v41 = vpop.f32.mrf.mxu1 }
 0x185   : > { %734 = vst [vmem:[%s1330_s30 + $0x58] sm:$0xff] %v718_v36  ;;  %v999_v42 = vadd.f32 %v998_v41, %v997_v35  ;;  %v976_v43 = vpop.f32.mrf.mxu0 }
 0x186   : > { %v711_v44 = vadd.f32 %v975_v39, %v470_v37  ;;  %v1000_v45 = vpop.f32.mrf.mxu1 }
 0x187   : > { %v719_v46 = vadd.f32 %v999_v42, %v478_v40  ;;  %v977_v48 = vpop.f32.mrf.mxu0 }
 0x188   : > { %727 = vst [vmem:[%s1330_s30 + $0x20] sm:$0xff] %v711_v44  ;;  %v978_v49 = vadd.f32 %v977_v48, %v976_v43  ;;  %v1001_v51 = vpop.f32.mrf.mxu1 }
 0x189   : > { %735 = vst [vmem:[%s1330_s30 + $0x60] sm:$0xff] %v719_v46  ;;  %v1002_v52 = vadd.f32 %v1001_v51, %v1000_v45  ;;  %v979_v53 = vpop.f32.mrf.mxu0 }
 0x18a   : > { %v712_v54 = vadd.f32 %v978_v49, %v471_v47  ;;  %v1003_v55 = vpop.f32.mrf.mxu1 }
 0x18b   : > { %v720_v56 = vadd.f32 %v1002_v52, %v479_v50  ;;  %v980_v58 = vpop.f32.mrf.mxu0 }
 0x18c   : > { %728 = vst [vmem:[%s1330_s30 + $0x28] sm:$0xff] %v712_v54  ;;  %v981_v59 = vadd.f32 %v980_v58, %v979_v53  ;;  %v1004_v61 = vpop.f32.mrf.mxu1 }
 0x18d   : > { %736 = vst [vmem:[%s1330_s30 + $0x68] sm:$0xff] %v720_v56  ;;  %v1005_v62 = vadd.f32 %v1004_v61, %v1003_v55  ;;  %v982_v63 = vpop.f32.mrf.mxu0 }
 0x18e   : > { %v713_v0 = vadd.f32 %v981_v59, %v472_v57  ;;  %v1006_v1 = vpop.f32.mrf.mxu1 }
 0x18f   : > { %v721_v2 = vadd.f32 %v1005_v62, %v480_v60  ;;  %v983_v4 = vpop.f32.mrf.mxu0 }
 0x190   : > { %729 = vst [vmem:[%s1330_s30 + $0x30] sm:$0xff] %v713_v0  ;;  %v984_v5 = vadd.f32 %v983_v4, %v982_v63  ;;  %v1007_v7 = vpop.f32.mrf.mxu1 }
 0x191   : > { %737 = vst [vmem:[%s1330_s30 + $0x70] sm:$0xff] %v721_v2  ;;  %v1008_v8 = vadd.f32 %v1007_v7, %v1006_v1 }
 0x192   : > { %v714_v9 = vadd.f32 %v984_v5, %v473_v3 }
 0x193   : > { %v722_v10 = vadd.f32 %v1008_v8, %v481_v6 }
 0x194   : > { %730 = vst [vmem:[%s1330_s30 + $0x38] sm:$0xff] %v714_v9 }
 0x195   : > { %738 = vst [vmem:[%s1330_s30 + $0x78] sm:$0xff] %v722_v10 }
 0x196   : > { %1132 = shalt.err (!%p1129_p10)
}
 0x197   : > { %s1133_s21 = scalar_lea.hbm %s1479_s7, 2048  ;;  %s1137_s30 = scalar_lea.hbm %s1541_s3, 8192 }
 0x198   : > { %p1134_p11 = scmp.ne.s32.totalorder %s1479_s7, %s1133_s21  ;;  %p1138_p0 = scmp.lt.s32.totalorder %s1479_s7, %s1541_s3 }
 0x199   : > { %p1139_p1 = scmp.lt.s32.totalorder %s1137_s30, %s1133_s21 }
 0x19a   : > { %p1135_p12 = pnand %p1134_p11, %p1288_p3 }
 0x19b   : > { %p1140_p2 = por %p1139_p1, %p1138_p0 }
 0x19c   : > { %p1136_p13 = pneg %p1135_p12 }
 0x19e   : > { %p1141_p4 = pnand %p1140_p2, %p1136_p13 }
 0x1a0   : > { %1144 = shalt.err (!%p1141_p4)
}
 0x1a1   : > { %s1217_s23 = smov 128   ;;  %s1218_s5 = smov 8  }
 0x1a2   : > { %1025 = dma.vmem_to_hbm [thread:$0]  (%p1288_p3), %s1481_s4, 2048, %s1479_s7, %s1487_s8, %s1217_s23, %s1217_s23, %s1218_s5  }
 0x1a3 PF: > { %p1031_p5 = scmp.ge.s32.totalorder %s1211_s19, 2  ;;  %s768_s6 = sand.u32 1, %s1183_s12  }
 0x1a4   : > { %s769_s16 = scalar_lea.sflag [#allocation3], %s768_s6 }
 0x1a5   : > { %p1028_p6 = pnand %p1031_p5, %p1298_p9 }
 0x1a7   : > { %p1029_p7 = pneg %p1028_p6 }
 0x1a9   : > { %1178 = dma.done.wait (%p1029_p7), %s769_s16, 2048  }
 0x1aa   : > { %1180 = vsyncadd (%p1029_p7), %s769_s16, 4294965248  ;;  %s16_s19 = sadd.s32 1, %s1211_s19   ;;  %s1550_s24 = sld [smem:[#allocation5_spill]] }
 0x1ab   : > { %p13_p8 = scmp.ge.s32.totalorder %s16_s19, 10   ;;  %s1551_s12 = smov %s1187_s13 }
 0x1ac   : > { %s1552_s13 = smov %s1191_s14  ;;  %s1553_s14 = smov %s1306_s28 }
 0x1ad   : > { %s1554_s15 = smov %s1203_s17  ;;  %s1555_s16 = smov %s1207_s18 }
 0x1ae   : > { %s1556_s17 = smov %s1559_s22  ;;  %15 = sbr.rel (!%p13_p8) target bundleno = 5 (0x5), region = 77 }
 0x1b0   : > { %s1557_s18 = smov %s1550_s24 }
 0x1b3   :  { %774 = vsyncpa [#allocation3], 1 }
 0x1b4   :  { %776 = vsyncpa [#allocation3 + $0x1], 1 }

</bundles_post_ra>
